<compile_context>
chip_gen: v6e
topology: v6e:2x2x1
jax: 0.10.0
libtpu: 0.0.40
codegen_flags: <defaults>
</compile_context>

<pallas_src>
import functools

import jax
import jax.numpy as jnp
from jax.experimental import pallas as pl
from jax.experimental.pallas import tpu as pltpu

P_DROP = 0.1
SCALE = 2048.0

# Conservative VMEM budget (bytes) for the live, double-buffered blocks.
# Fits the default scoped-VMEM on v5e/v6e and well under v7x's 64 MiB physical.
_VMEM_BUDGET_BYTES = 20 * 1024 * 1024


def _attn_kernel(*refs, apply_dropout):
    if apply_dropout:
        q_ref, k_ref, v_ref, drop_ref, o_ref = refs
    else:
        q_ref, k_ref, v_ref, o_ref = refs
        drop_ref = None

    # Fold the 1/2048 scale into q (power of two -> exact, touches the tiny tile).
    q = q_ref[...] * (1.0 / SCALE)          # (Bb, Lq, D)  compute dtype
    k = k_ref[...]                          # (Bb, Lk, D)
    v = v_ref[...]                          # (Bb, Lk, Dv)

    # s[b, q, k] = sum_d q[b, q, d] * k[b, k, d]  (contract on d, no K transpose)
    s = jax.lax.dot_general(
        q, k,
        dimension_numbers=(((2,), (2,)), ((0,), (0,))),
        preferred_element_type=jnp.float32,
    )                                       # (Bb, Lq, Lk) f32

    # softmax over the key axis, in f32
    m = jnp.max(s, axis=-1, keepdims=True)
    e = jnp.exp(s - m)
    denom = jnp.sum(e, axis=-1, keepdims=True)
    p = e * (1.0 / denom)

    if apply_dropout:
        # drop_ref holds {0, 1/(1-P_DROP)} per element (training semantics).
        p = p * drop_ref[...]

    # out[b, q, dv] = sum_k p[b, q, k] * v[b, k, dv]
    out = jax.lax.dot_general(
        p.astype(v.dtype), v,
        dimension_numbers=(((2,), (1,)), ((0,), (0,))),
        preferred_element_type=jnp.float32,
    )                                       # (Bb, Lq, Dv) f32
    o_ref[...] = out.astype(o_ref.dtype)


def _pick_batch_block(batch, per_batch_bytes):
    """Largest divisor of `batch` whose double-buffered block fits the budget."""
    bb_max = max(1, _VMEM_BUDGET_BYTES // max(1, 2 * per_batch_bytes))
    bb = 1
    for cand in range(1, batch + 1):
        if batch % cand == 0 and cand <= bb_max:
            bb = cand
    return bb


def sdpa_dropout(query, key, value, attn_mask=None, *, seed=0,
                 training=True, compute_dtype=jnp.bfloat16):
    # attn_mask is accepted for signature parity but (like the PyTorch forward)
    # is never used.
    del attn_mask

    B, Lq, D = query.shape
    Bk, Lk, Dk = key.shape
    Bv, Lkv, Dv = value.shape
    assert Bk == B and Bv == B and Dk == D and Lkv == Lk

    cdt = jnp.dtype(compute_dtype)
    q = query.astype(cdt)
    k = key.astype(cdt)
    v = value.astype(cdt)

    inputs = [q, k, v]
    per_batch_bytes = (Lq * D + Lk * D + Lk * Dv) * cdt.itemsize + Lq * Dv * 4
    bytes_accessed = B * (Lq * D + Lk * D + Lk * Dv) * cdt.itemsize + B * Lq * Dv * 4

    if training:
        # Dropout mask generated host-side (RNG stream differs from PyTorch's,
        # keep-probability / scaling semantics match nn.Dropout(p=0.1)).
        keep = jax.random.bernoulli(
            jax.random.PRNGKey(seed), p=1.0 - P_DROP, shape=(B, Lq, Lk))
        drop_mult = keep.astype(jnp.float32) * (1.0 / (1.0 - P_DROP))
        inputs.append(drop_mult)
        per_batch_bytes += Lq * Lk * 4
        bytes_accessed += B * Lq * Lk * 4

    Bb = _pick_batch_block(B, per_batch_bytes)
    grid = (B // Bb,)

    in_specs = [
        pl.BlockSpec((Bb, Lq, D), lambda b: (b, 0, 0)),
        pl.BlockSpec((Bb, Lk, D), lambda b: (b, 0, 0)),
        pl.BlockSpec((Bb, Lk, Dv), lambda b: (b, 0, 0)),
    ]
    if training:
        in_specs.append(pl.BlockSpec((Bb, Lq, Lk), lambda b: (b, 0, 0)))
    out_spec = pl.BlockSpec((Bb, Lq, Dv), lambda b: (b, 0, 0))

    cost = pl.CostEstimate(
        flops=2 * B * Lq * Lk * (D + Dv),
        transcendentals=B * Lq * Lk,
        bytes_accessed=bytes_accessed,
    )

    kernel = functools.partial(_attn_kernel, apply_dropout=training)

    return pl.pallas_call(
        kernel,
        out_shape=jax.ShapeDtypeStruct((B, Lq, Dv), jnp.float32),
        grid=grid,
        in_specs=in_specs,
        out_specs=out_spec,
        compiler_params=pltpu.CompilerParams(
            dimension_semantics=("parallel",),       # batch is independent
            vmem_limit_bytes=48 * 1024 * 1024,
        ),
        cost_estimate=cost,
    )(*inputs)


if __name__ == "__main__":
    # Small shapes consistent with the module's (B, Lq, D)/(B, Lk, D)/(B, Lk, Dv)
    # convention (original script used B=128, Lq=4, Lk=1024, D/Dv=512).
    B, Lq, Lk, D, Dv = 2, 8, 128, 128, 128

    k0, k1, k2, k3 = jax.random.split(jax.random.PRNGKey(0), 4)
    query = jax.random.normal(k0, (B, Lq, D), dtype=jnp.float32)
    key = jax.random.normal(k1, (B, Lk, D), dtype=jnp.float32)
    value = jax.random.normal(k2, (B, Lk, Dv), dtype=jnp.float32)
    attn_mask = jax.random.normal(k3, (B, Lq, Lk), dtype=jnp.float32)  # unused

    out = sdpa_dropout(query, key, value, attn_mask, seed=0, training=True)
    jax.block_until_ready(out)
    assert out.shape == (B, Lq, Dv)

    # Pure-JAX reference with identical dropout multiplier and bf16 operand cast.
    keep = jax.random.bernoulli(jax.random.PRNGKey(0), p=1.0 - P_DROP,
                                shape=(B, Lq, Lk))
    mult = keep.astype(jnp.float32) * (1.0 / (1.0 - P_DROP))
    qb, kb, vb = (t.astype(jnp.bfloat16) for t in (query, key, value))
    s_ref = jnp.einsum("bqd,bkd->bqk", qb * (1.0 / SCALE), kb,
                       preferred_element_type=jnp.float32)
    p_ref = jax.nn.softmax(s_ref, axis=-1) * mult
    ref = jnp.einsum("bqk,bkd->bqd", p_ref.astype(jnp.bfloat16), vb,
                     preferred_element_type=jnp.float32)
    assert jnp.allclose(out, ref, rtol=5e-2, atol=5e-2)

    print("KERNEL_OK")
</pallas_src>

<mosaic_0001>
module attributes {stable_mosaic.version = 11 : i64} {
  func.func @_attn_kernel(%arg0: i32, %arg1: memref<2x8x128xbf16, #tpu.memory_space<vmem>>, %arg2: memref<2x128x128xbf16, #tpu.memory_space<vmem>>, %arg3: memref<2x128x128xbf16, #tpu.memory_space<vmem>>, %arg4: memref<2x8x128xf32, #tpu.memory_space<vmem>>, %arg5: memref<2x8x128xf32, #tpu.memory_space<vmem>>) attributes {dimension_semantics = [#tpu.dimension_semantics<parallel>], iteration_bounds = array<i64: 1>, scalar_prefetch = 0 : i64, scratch_operands = 0 : i64, tpu.core_type = #tpu.core_type<tc>, window_params = [{transform_indices = @transform_0, window_bounds = array<i64: 2, 8, 128>}, {transform_indices = @transform_1, window_bounds = array<i64: 2, 128, 128>}, {transform_indices = @transform_2, window_bounds = array<i64: 2, 128, 128>}, {transform_indices = @transform_3, window_bounds = array<i64: 2, 8, 128>}, {transform_indices = @transform_4, window_bounds = array<i64: 2, 8, 128>}]} {
    %c0 = arith.constant 0 : index
    %c0_0 = arith.constant 0 : index
    %c0_1 = arith.constant 0 : index
    %0 = vector.load %arg1[%c0, %c0_0, %c0_1] : memref<2x8x128xbf16, #tpu.memory_space<vmem>>, vector<2x8x128xbf16>
    %cst = arith.constant 4.882810e-04 : bf16
    %1 = vector.broadcast %cst : bf16 to vector<2x8x128xbf16>
    %2 = arith.mulf %0, %1 : vector<2x8x128xbf16>
    %c0_2 = arith.constant 0 : index
    %c0_3 = arith.constant 0 : index
    %c0_4 = arith.constant 0 : index
    %3 = vector.load %arg2[%c0_2, %c0_3, %c0_4] : memref<2x128x128xbf16, #tpu.memory_space<vmem>>, vector<2x128x128xbf16>
    %c0_5 = arith.constant 0 : index
    %c0_6 = arith.constant 0 : index
    %c0_7 = arith.constant 0 : index
    %4 = vector.load %arg3[%c0_5, %c0_6, %c0_7] : memref<2x128x128xbf16, #tpu.memory_space<vmem>>, vector<2x128x128xbf16>
    %cst_8 = arith.constant dense<0.000000e+00> : vector<2x8x128xf32>
    %5 = tpu.matmul %2, %3, %cst_8 {dimension_numbers = #tpu.dot_dimension_numbers<[2], [2], [1], [1], [0, 0, 0, 1, 1, 1], [0], [0]>} : vector<2x8x128xbf16>, vector<2x128x128xbf16>, vector<2x8x128xf32> -> vector<2x8x128xf32>
    %cst_9 = arith.constant dense<0xFF800000> : vector<2x8xf32>
    %6 = vector.multi_reduction <maximumf>, %5, %cst_9 [2] : vector<2x8x128xf32> to vector<2x8xf32>
    %7 = vector.shape_cast %6 : vector<2x8xf32> to vector<2x8x1xf32>
    %8 = vector.broadcast %7 : vector<2x8x1xf32> to vector<2x8x128xf32>
    %9 = arith.subf %5, %8 : vector<2x8x128xf32>
    %10 = math.exp %9 : vector<2x8x128xf32>
    %cst_10 = arith.constant dense<0.000000e+00> : vector<2x8xf32>
    %11 = vector.multi_reduction <add>, %10, %cst_10 [2] : vector<2x8x128xf32> to vector<2x8xf32>
    %12 = vector.shape_cast %11 : vector<2x8xf32> to vector<2x8x1xf32>
    %cst_11 = arith.constant 1.000000e+00 : f32
    %13 = vector.broadcast %cst_11 : f32 to vector<2x8x1xf32>
    %14 = arith.divf %13, %12 : vector<2x8x1xf32>
    %15 = vector.broadcast %14 : vector<2x8x1xf32> to vector<2x8x128xf32>
    %16 = arith.mulf %10, %15 : vector<2x8x128xf32>
    %c0_12 = arith.constant 0 : index
    %c0_13 = arith.constant 0 : index
    %c0_14 = arith.constant 0 : index
    %17 = vector.load %arg4[%c0_12, %c0_13, %c0_14] : memref<2x8x128xf32, #tpu.memory_space<vmem>>, vector<2x8x128xf32>
    %18 = arith.mulf %16, %17 : vector<2x8x128xf32>
    %19 = arith.truncf %18 : vector<2x8x128xf32> to vector<2x8x128xbf16>
    %cst_15 = arith.constant dense<0.000000e+00> : vector<2x8x128xf32>
    %20 = tpu.matmul %19, %4, %cst_15 {dimension_numbers = #tpu.dot_dimension_numbers<[2], [1], [1], [2], [0, 0, 0, 1, 1, 2], [0], [0]>} : vector<2x8x128xbf16>, vector<2x128x128xbf16>, vector<2x8x128xf32> -> vector<2x8x128xf32>
    %c0_16 = arith.constant 0 : index
    %c0_17 = arith.constant 0 : index
    %c0_18 = arith.constant 0 : index
    %21 = vector.load %arg5[%c0_16, %c0_17, %c0_18] : memref<2x8x128xf32, #tpu.memory_space<vmem>>, vector<2x8x128xf32>
    tpu.vector_store %arg5[%c0_16, %c0_17, %c0_18], %20 {strides = array<i32>} : memref<2x8x128xf32, #tpu.memory_space<vmem>>, vector<2x8x128xf32>,
    return
  }
  func.func @transform_0(%arg0: i32) -> (i32, i32, i32) {
    %c0_i32 = arith.constant 0 : i32
    %c0_i32_0 = arith.constant 0 : i32
    %c0_i32_1 = arith.constant 0 : i32
    return %arg0, %c0_i32, %c0_i32_0 : i32, i32, i32
  }
  func.func @transform_1(%arg0: i32) -> (i32, i32, i32) {
    %c0_i32 = arith.constant 0 : i32
    %c0_i32_0 = arith.constant 0 : i32
    %c0_i32_1 = arith.constant 0 : i32
    return %arg0, %c0_i32, %c0_i32_0 : i32, i32, i32
  }
  func.func @transform_2(%arg0: i32) -> (i32, i32, i32) {
    %c0_i32 = arith.constant 0 : i32
    %c0_i32_0 = arith.constant 0 : i32
    %c0_i32_1 = arith.constant 0 : i32
    return %arg0, %c0_i32, %c0_i32_0 : i32, i32, i32
  }
  func.func @transform_3(%arg0: i32) -> (i32, i32, i32) {
    %c0_i32 = arith.constant 0 : i32
    %c0_i32_0 = arith.constant 0 : i32
    %c0_i32_1 = arith.constant 0 : i32
    return %arg0, %c0_i32, %c0_i32_0 : i32, i32, i32
  }
  func.func @transform_4(%arg0: i32) -> (i32, i32, i32) {
    %c0_i32 = arith.constant 0 : i32
    %c0_i32_0 = arith.constant 0 : i32
    %c0_i32_1 = arith.constant 0 : i32
    return %arg0, %c0_i32, %c0_i32_0 : i32, i32, i32
  }
}

</mosaic_0001>

<bundles_post_ra>
// kernel: tpu_custom_call.1
= control target key start
LH: loop header
LB: loop body
LE: loop exit
PB: predicated region body
PF: predicated region fallthrough
CT: control target
= control target key end

     0   :  { %9 = vsyncpa [#allocation3], 0  ;;  %s946_s0 = inlined_call_operand.hbm [shape: bf16[2,8,128], index: 0, kind: input, shape index: {}]   ;;  %s947_s1 = inlined_call_operand.hbm [shape: bf16[2,128,128], index: 1, kind: input, shape index: {}]   ;;  %s948_s2 = inlined_call_operand.hbm [shape: bf16[2,128,128], index: 2, kind: input, shape index: {}]   ;;  %s949_s3 = inlined_call_operand.hbm [shape: f32[2,8,128], index: 3, kind: input, shape index: {}]   ;;  %s950_s4 = inlined_call_operand.hbm [shape: f32[2,8,128], index: 4, kind: output, shape index: {}]  }
   0x1   :  { %10 = vsyncpa [#allocation6], 0 }
   0x2   :  { %11 = vsyncpa [#allocation9], 0 }
   0x3   :  { %12 = vsyncpa [#allocation4], 0  ;;  %s849_s15 = smov [#allocation5]   ;;  %s850_s17 = smov [#allocation2]  }
   0x4   :  { %s30_s16 = sshll.u32 %s849_s15, 4  ;;  %s18_s18 = sshll.u32 %s850_s17, 4  ;;  %s31_s16 = int_to_ptr.vmem [resolvable:$true] %s30_s16  ;;  %s19_s18 = int_to_ptr.vmem [resolvable:$true] %s18_s18 }
   0x5   :  { %s749_s19 = scalar_lea.vmem %s31_s16, 2048  ;;  %p754_p1 = scmp.lt.s32.totalorder %s31_s16, %s31_s16 }
   0x6   :  { %p750_p0 = scmp.ne.s32.totalorder %s31_s16, %s749_s19  ;;  %p755_p2 = scmp.lt.s32.totalorder %s749_s19, %s749_s19 }
   0x8   :  { %p756_p3 = por %p755_p2, %p754_p1 }
   0xa   :  { %p757_p4 = pnand %p756_p3, %p750_p0 }
   0xc   :  { %760 = shalt.err (!%p757_p4)
}
   0xd   :  { %s851_s20 = smov 64   ;;  %s852_s21 = smov 4  }
   0xe   :  { %36 = dma.hbm_to_vmem [thread:$0]  %s947_s1, 2048, %s31_s16, [#allocation6], %s851_s20, %s851_s20, %s852_s21  }
   0xf   :  { %s769_s24 = scalar_lea.vmem %s19_s18, 128  ;;  %p774_p6 = scmp.lt.s32.totalorder %s19_s18, %s19_s18 }
  0x10   :  { %p770_p5 = scmp.ne.s32.totalorder %s19_s18, %s769_s24  ;;  %p775_p7 = scmp.lt.s32.totalorder %s769_s24, %s769_s24 }
  0x12   :  { %p776_p8 = por %p775_p7, %p774_p6 }
  0x14   :  { %p777_p9 = pnand %p776_p8, %p770_p5 }
  0x16   :  { %780 = shalt.err (!%p777_p9)
}
  0x17   :  { %24 = dma.hbm_to_vmem [thread:$0]  %s946_s0, 128, %s19_s18, [#allocation3], %s851_s20, %s851_s20, %s852_s21  }
  0x18   :  { %s853_s27 = smov [#allocation7]   ;;  %s854_s29 = smov [#allocation8]  }
  0x19   :  { %s42_s28 = sshll.u32 %s853_s27, 4  ;;  %s54_s30 = sshll.u32 %s854_s29, 4  ;;  %s43_s28 = int_to_ptr.vmem [resolvable:$true] %s42_s28  ;;  %s55_s30 = int_to_ptr.vmem [resolvable:$true] %s54_s30 }
  0x1a   :  { %s789_s5 = scalar_lea.vmem %s43_s28, 2048  ;;  %p794_p11 = scmp.lt.s32.totalorder %s43_s28, %s43_s28 }
  0x1b   :  { %p790_p10 = scmp.ne.s32.totalorder %s43_s28, %s789_s5  ;;  %p795_p12 = scmp.lt.s32.totalorder %s789_s5, %s789_s5 }
  0x1d   :  { %p796_p13 = por %p795_p12, %p794_p11 }
  0x1f   :  { %p797_p0 = pnand %p796_p13, %p790_p10 }
  0x21   :  { %800 = shalt.err (!%p797_p0)
}
  0x22   :  { %48 = dma.hbm_to_vmem [thread:$0]  %s948_s2, 2048, %s43_s28, [#allocation6], %s851_s20, %s851_s20, %s852_s21  }
  0x23   :  { %s809_s7 = scalar_lea.vmem %s55_s30, 256  ;;  %p814_p2 = scmp.lt.s32.totalorder %s55_s30, %s55_s30 }
  0x24   :  { %p810_p1 = scmp.ne.s32.totalorder %s55_s30, %s809_s7  ;;  %p815_p3 = scmp.lt.s32.totalorder %s809_s7, %s809_s7 }
  0x26   :  { %p816_p4 = por %p815_p3, %p814_p2 }
  0x28   :  { %p817_p5 = pnand %p816_p4, %p810_p1 }
  0x2a   :  { %820 = shalt.err (!%p817_p5)
}
  0x2b   :  { %s855_s0 = smov 128   ;;  %s856_s8 = smov 8  }
  0x2c   :  { %60 = dma.hbm_to_vmem [thread:$0]  %s949_s3, 256, %s55_s30, [#allocation9], %s855_s0, %s855_s0, %s856_s8  }
  0x2d   :  { %841 = dma.done.wait [#allocation3], 128  }
  0x2e   :  { %842 = vsyncadd [#allocation3], 4294967168 }
  0x2f   :  { %843 = dma.done.wait [#allocation6], 4096  }
  0x30   :  { %844 = vsyncadd [#allocation6], 4294963200 }
  0x31   :  { %845 = dma.done.wait [#allocation9], 256  }
  0x32   :  { %846 = vsyncadd [#allocation9], 4294967040  ;;  %v857_v0 = vmov 0.0   ;;  %vm858_vm0 = vmmov 0   ;;  %v701_v1 = vld [vmem:[#allocation5 + $0x38] sm:$0xff]   ;;  %v703_v3 = vld [vmem:[#allocation5 + $0x30] sm:$0xff]  }
  0x33   :  { %610 = vmatprep.subr.bf16.mxu0 %v857_v0  ;;  %630 = vmatprep.subr.bf16.mxu1 %v857_v0  ;;  %v702_v2 = vld [vmem:[#allocation5 + $0x78] sm:$0xff]   ;;  %v704_v4 = vld [vmem:[#allocation5 + $0x70] sm:$0xff]   ;;  %v705_v5 = vld [vmem:[#allocation5 + $0x28] sm:$0xff]   ;;  %s859_s2 = smov [#allocation10]  }
  0x34   :  { %626 = vmatprep.mubr.msk.bf16.mxu0 %vm858_vm0, %v857_v0  ;;  %646 = vmatprep.mubr.msk.bf16.mxu1 %vm858_vm0, %v857_v0  ;;  %v706_v6 = vld [vmem:[#allocation5 + $0x68] sm:$0xff]   ;;  %v707_v7 = vld [vmem:[#allocation5 + $0x20] sm:$0xff]   ;;  %v709_v9 = vld [vmem:[#allocation5 + $0x18] sm:$0xff]   ;;  %s528_s3 = sshll.u32 %s859_s2, 4  ;;  %s529_s3 = int_to_ptr.vmem [resolvable:$true] %s528_s3 }
  0x35   :  { %611 = vmatpush3.bf16.xpose.msra.mxu0 %v701_v1  ;;  %631 = vmatpush3.bf16.xpose.msra.mxu1 %v702_v2  ;;  %v708_v8 = vld [vmem:[#allocation5 + $0x60] sm:$0xff]   ;;  %v710_v10 = vld [vmem:[#allocation5 + $0x58] sm:$0xff]   ;;  %v711_v11 = vld [vmem:[#allocation5 + $0x10] sm:$0xff]   ;;  %s821_s11 = scalar_lea.vmem %s529_s3, 256  ;;  %p826_p7 = scmp.lt.s32.totalorder %s529_s3, %s529_s3 }
  0x36   :  { %612 = vmatprep.subr.bf16.mxu0 %v857_v0  ;;  %632 = vmatprep.subr.bf16.mxu1 %v857_v0  ;;  %v712_v12 = vld [vmem:[#allocation5 + $0x50] sm:$0xff]   ;;  %v713_v13 = vld [vmem:[#allocation5 + $0x8] sm:$0xff]   ;;  %v715_v15 = vld [vmem:[#allocation5] sm:$0xff]   ;;  %p822_p6 = scmp.ne.s32.totalorder %s529_s3, %s821_s11  ;;  %p827_p8 = scmp.lt.s32.totalorder %s821_s11, %s821_s11 }
  0x37   :  { %v714_v14 = vld [vmem:[#allocation5 + $0x48] sm:$0xff]   ;;  %v716_v16 = vld [vmem:[#allocation5 + $0x40] sm:$0xff]   ;;  %v75_v17 = vld [vmem:[#allocation2] sm:$0xf] }
  0x38   :  { %v76_v18 = vld [vmem:[#allocation2 + $0x4] sm:$0xf]  ;;  %v77_v19 = vmul.bf16 973093376, %v75_v17  ;;  %v718_v31 = vld [vmem:[#allocation7 + $0x30] sm:$0xff]   ;;  %v720_v33 = vld [vmem:[#allocation7 + $0x28] sm:$0xff]   ;;  %p828_p9 = por %p827_p8, %p826_p7 }
  0x39   :  { %v78_v20 = vmul.bf16 973093376, %v76_v18  ;;  %v717_v29 = vld [vmem:[#allocation7 + $0x38] sm:$0xff]   ;;  %v721_v32 = vld [vmem:[#allocation7 + $0x70] sm:$0xff]   ;;  %v722_v42 = vld [vmem:[#allocation7 + $0x20] sm:$0xff]  }
  0x3a   :  { %v719_v30 = vld [vmem:[#allocation7 + $0x78] sm:$0xff]   ;;  %v723_v43 = vld [vmem:[#allocation7 + $0x68] sm:$0xff]   ;;  %v725_v45 = vld [vmem:[#allocation7 + $0x60] sm:$0xff]   ;;  %p829_p10 = pnand %p828_p9, %p822_p6 }
  0x3b   :  { %v724_v44 = vld [vmem:[#allocation7 + $0x18] sm:$0xff]   ;;  %v726_v46 = vld [vmem:[#allocation7 + $0x10] sm:$0xff]   ;;  %v728_v48 = vld [vmem:[#allocation7 + $0x8] sm:$0xff]  }
  0x3c   :  { %v727_v47 = vld [vmem:[#allocation7 + $0x58] sm:$0xff]   ;;  %v729_v49 = vld [vmem:[#allocation7 + $0x50] sm:$0xff]   ;;  %v730_v50 = vld [vmem:[#allocation7] sm:$0xff]  }
  0x3d   :  { %613 = vmatpush3.bf16.xpose.msra.mxu0 %v703_v3  ;;  %633 = vmatpush3.bf16.xpose.msra.mxu1 %v704_v4  ;;  %v731_v51 = vld [vmem:[#allocation7 + $0x48] sm:$0xff]   ;;  %v732_v52 = vld [vmem:[#allocation7 + $0x40] sm:$0xff]  }
  0x3e   :  { %614 = vmatprep.subr.bf16.mxu0 %v857_v0  ;;  %634 = vmatprep.subr.bf16.mxu1 %v857_v0  ;;  %v339_v56 = vld [vmem:[#allocation8] sm:$0xff]  ;;  %v340_v60 = vld [vmem:[#allocation8 + $0x8] sm:$0xff] }
  0x45   :  { %615 = vmatpush3.bf16.xpose.msra.mxu0 %v705_v5  ;;  %635 = vmatpush3.bf16.xpose.msra.mxu1 %v706_v6 }
  0x46   :  { %616 = vmatprep.subr.bf16.mxu0 %v857_v0  ;;  %636 = vmatprep.subr.bf16.mxu1 %v857_v0 }
  0x4d   :  { %617 = vmatpush3.bf16.xpose.msra.mxu0 %v707_v7  ;;  %637 = vmatpush3.bf16.xpose.msra.mxu1 %v708_v8 }
  0x4e   :  { %618 = vmatprep.subr.bf16.mxu0 %v857_v0  ;;  %638 = vmatprep.subr.bf16.mxu1 %v857_v0 }
  0x55   :  { %619 = vmatpush3.bf16.xpose.msra.mxu0 %v709_v9  ;;  %639 = vmatpush3.bf16.xpose.msra.mxu1 %v710_v10 }
  0x56   :  { %620 = vmatprep.subr.bf16.mxu0 %v857_v0  ;;  %640 = vmatprep.subr.bf16.mxu1 %v857_v0 }
  0x5d   :  { %621 = vmatpush3.bf16.xpose.msra.mxu0 %v711_v11  ;;  %641 = vmatpush3.bf16.xpose.msra.mxu1 %v712_v12 }
  0x5e   :  { %622 = vmatprep.subr.bf16.mxu0 %v857_v0  ;;  %642 = vmatprep.subr.bf16.mxu1 %v857_v0 }
  0x65   :  { %623 = vmatpush3.bf16.xpose.msra.mxu0 %v713_v13  ;;  %643 = vmatpush3.bf16.xpose.msra.mxu1 %v714_v14 }
  0x66   :  { %624 = vmatprep.subr.bf16.mxu0 %v857_v0  ;;  %644 = vmatprep.subr.bf16.mxu1 %v857_v0 }
  0x6d   :  { %625 = vmatpush3.bf16.xpose.msra.mxu0 %v715_v15  ;;  %645 = vmatpush3.bf16.xpose.msra.mxu1 %v716_v16 }
  0x6e   :  { %650 = vmatprep.subr.bf16.mxu0 %v857_v0  ;;  %670 = vmatprep.subr.bf16.mxu1 %v857_v0 }
  0x74   :  { %627 = vmatmul.mubr.bf16.vlgmr.msra.gmra.mxu0 %v77_v19  ;;  %647 = vmatmul.mubr.bf16.vlgmr.msra.gmra.mxu1 %v78_v20 }
  0x75   :  { %666 = vmatprep.mubr.msk.bf16.mxu0 %vm858_vm0, %v857_v0  ;;  %686 = vmatprep.mubr.msk.bf16.mxu1 %vm858_vm0, %v857_v0 }
  0x76   :  { %651 = vmatpush3.bf16.msra.mxu0 %v717_v29  ;;  %671 = vmatpush3.bf16.msra.mxu1 %v719_v30 }
  0x77   :  { %652 = vmatprep.subr.bf16.mxu0 %v857_v0  ;;  %672 = vmatprep.subr.bf16.mxu1 %v857_v0 }
  0x7a   :  { %653 = vmatpush3.bf16.msra.mxu0 %v718_v31  ;;  %673 = vmatpush3.bf16.msra.mxu1 %v721_v32 }
  0x7b   :  { %654 = vmatprep.subr.bf16.mxu0 %v857_v0  ;;  %674 = vmatprep.subr.bf16.mxu1 %v857_v0 }
  0x7e   :  { %655 = vmatpush3.bf16.msra.mxu0 %v720_v33  ;;  %675 = vmatpush3.bf16.msra.mxu1 %v723_v43 }
  0x7f   :  { %656 = vmatprep.subr.bf16.mxu0 %v857_v0  ;;  %676 = vmatprep.subr.bf16.mxu1 %v857_v0 }
  0x82   :  { %657 = vmatpush3.bf16.msra.mxu0 %v722_v42  ;;  %677 = vmatpush3.bf16.msra.mxu1 %v725_v45 }
  0x83   :  { %658 = vmatprep.subr.bf16.mxu0 %v857_v0  ;;  %678 = vmatprep.subr.bf16.mxu1 %v857_v0 }
  0x86   :  { %659 = vmatpush3.bf16.msra.mxu0 %v724_v44  ;;  %679 = vmatpush3.bf16.msra.mxu1 %v727_v47 }
  0x87   :  { %660 = vmatprep.subr.bf16.mxu0 %v857_v0  ;;  %680 = vmatprep.subr.bf16.mxu1 %v857_v0 }
  0x8a   :  { %661 = vmatpush3.bf16.msra.mxu0 %v726_v46  ;;  %681 = vmatpush3.bf16.msra.mxu1 %v729_v49 }
  0x8b   :  { %662 = vmatprep.subr.bf16.mxu0 %v857_v0  ;;  %682 = vmatprep.subr.bf16.mxu1 %v857_v0 }
  0x8e   :  { %663 = vmatpush3.bf16.msra.mxu0 %v728_v48  ;;  %683 = vmatpush3.bf16.msra.mxu1 %v731_v51 }
  0x8f   :  { %664 = vmatprep.subr.bf16.mxu0 %v857_v0  ;;  %684 = vmatprep.subr.bf16.mxu1 %v857_v0 }
  0x92   :  { %665 = vmatpush3.bf16.msra.mxu0 %v730_v50  ;;  %685 = vmatpush3.bf16.msra.mxu1 %v732_v52 }
 0x134   :  { %v225_v21 = vpop.f32.mrf.mxu0  ;;  %v313_v22 = vpop.f32.mrf.mxu1 }
 0x135   :  { %319 = vmax.xlane.f32.xlu0 %v225_v21 }
 0x136   :  { %v628_v23 = vpop.f32.mrf.mxu0  ;;  %v648_v24 = vpop.f32.mrf.mxu1 }
 0x138   :  { %v228_v25 = vpop.f32.mrf.mxu0  ;;  %v316_v26 = vpop.f32.mrf.mxu1 }
 0x139   :  { %321 = vmax.xlane.f32.xlu0 %v313_v22 }
 0x13a   :  { %v629_v27 = vpop.f32.mrf.mxu0  ;;  %v649_v28 = vpop.f32.mrf.mxu1 }
 0x1be   :  { %v320_v34 = vpop.xlane.xlu0 %319 }
 0x1bf   :  { %v323_v35 = vsub.f32 %v225_v21, %v320_v34 }
 0x1c1   :  { %v325_v36 = vmul.f32 1.442695, %v323_v35 }
 0x1c2   :  { %v322_v37 = vpop.xlane.xlu0 %321 }
 0x1c3   :  { %733 = vpow2.f32 %v325_v36  ;;  %v324_v38 = vsub.f32 %v313_v22, %v322_v37 }
 0x1c5   :  { %v327_v39 = vmul.f32 1.442695, %v324_v38 }
 0x1c7   :  { %735 = vpow2.f32 %v327_v39 }
 0x1d0   :  { %v734_v40 = vpop.eup %733 }
 0x1d1   :  { %329 = vadd.xlane.f32.xlu1 %v734_v40 }
 0x1d4   :  { %v736_v41 = vpop.eup %735 }
 0x1d5   :  { %331 = vadd.xlane.f32.xlu1 %v736_v41 }
 0x25a   :  { %v330_v53 = vpop.xlane.xlu1 %329 }
 0x25b   :  { %737 = vrcp.f32 %v330_v53 }
 0x25e   :  { %v332_v54 = vpop.xlane.xlu1 %331 }
 0x25f   :  { %739 = vrcp.f32 %v332_v54 }
 0x268   :  { %v738_v55 = vpop.eup %737 }
 0x269   :  { %v337_v57 = vmul.f32 %v738_v55, %v734_v40 }
 0x26b   :  { %v341_v58 = vmul.f32 %v339_v56, %v337_v57 }
 0x26c   :  { %v740_v59 = vpop.eup %739 }
 0x26d   :  { %v343_v61 = vpack.c.bf16 %v341_v58, %v341_v58  ;;  %v338_v62 = vmul.f32 %v740_v59, %v736_v41 }
 0x26f   :  { %667 = vmatmul.mubr.bf16.vlgmr.msra.gmra.mxu0 %v343_v61  ;;  %v342_v63 = vmul.f32 %v340_v60, %v338_v62 }
 0x271   :  { %v344_v1 = vpack.c.bf16 %v342_v63, %v342_v63 }
 0x273   :  { %687 = vmatmul.mubr.bf16.vlgmr.msra.gmra.mxu1 %v344_v1 }
 0x32f   :  { %v427_v2 = vpop.f32.mrf.mxu0 }
 0x330   :  { %521 = vst [vmem:[#allocation10] sm:$0xff] %v427_v2 }
 0x331   :  { %v668_v0 = vpop.f32.mrf.mxu0 }
 0x333   :  { %v430_v3 = vpop.f32.mrf.mxu0  ;;  %v515_v4 = vpop.f32.mrf.mxu1 }
 0x334   :  { %522 = vst [vmem:[#allocation10 + $0x8] sm:$0xff] %v515_v4 }
 0x335   :  { %v669_v5 = vpop.f32.mrf.mxu0  ;;  %v688_v6 = vpop.f32.mrf.mxu1 }
 0x336   :  { %832 = shalt.err (!%p829_p10)
}
 0x337   :  { %534 = dma.vmem_to_hbm [thread:$0]  %s529_s3, 256, %s950_s4, [#allocation4], %s855_s0, %s855_s0, %s856_s8   ;;  %v518_v7 = vpop.f32.mrf.mxu1 }
 0x339   :  { %v689_v8 = vpop.f32.mrf.mxu1 }
 0x33a   :  { %847 = dma.done.wait [#allocation4], 256  }
 0x33b   :  { %848 = vsyncadd [#allocation4], 4294967040 }
 0x33c   :  { %538 = vsyncpa [#allocation3], 1 }
 0x33d   :  { %539 = vsyncpa [#allocation6], 1 }
 0x33e   :  { %540 = vsyncpa [#allocation9], 1 }
 0x33f   :  { %541 = vsyncpa [#allocation4], 1 }

</bundles_post_ra>
